<compile_context>
chip_gen: v7x
topology: tpu7x:2x2x1
jax: 0.10.0
libtpu: 0.0.40
codegen_flags: <defaults>
</compile_context>

<pallas_src>
import functools

import jax
import jax.numpy as jnp
from jax.experimental import pallas as pl
from jax.experimental.pallas import tpu as pltpu


_SUB_ROWS = 128  # rows per in-kernel sub-tile (128x128 f32 h = 16 vregs, no spill)


def gin_kernel(num_layers, num_sub, sub_rows, *refs):
    """refs = (x_ref, w0_ref, b0_ref, [w_rest_ref, b_rest_ref,] out_ref).

    x_ref:      [tm, F_in]            current block of node features
    w0_ref:     [F_in, F_out]         layer-0 weight, pre-transposed
    b0_ref:     [1, F_out]            layer-0 bias (f32)
    w_rest_ref: [L-1, F_out, F_out]   layers 1..L-1 weights, pre-transposed
    b_rest_ref: [L-1, 1, F_out]       layers 1..L-1 biases (f32)
    out_ref:    [tm, F_out]
    """
    x_ref, w0_ref, b0_ref = refs[0], refs[1], refs[2]
    out_ref = refs[-1]
    w_rest_ref = b_rest_ref = None
    if num_layers > 1:
        w_rest_ref, b_rest_ref = refs[3], refs[4]

    w0 = w0_ref[...]
    b0 = b0_ref[...]
    compute_dtype = w0.dtype

    # Static sub-tile loop: each sub-tile runs the whole fused MLP while its
    # activation stays small (bounded vreg pressure even at tm = 1024).
    for s in range(num_sub):
        r0 = s * sub_rows  # static offset
        x = x_ref[pl.ds(r0, sub_rows), :]

        # Layer 0: Linear only (reference applies ReLU only for i != 0).
        h = jnp.dot(x, w0, preferred_element_type=jnp.float32) + b0

        # Layers 1..L-1: Linear + ReLU.  num_layers is static -> unrolled.
        for i in range(num_layers - 1):
            h = jnp.dot(h.astype(compute_dtype), w_rest_ref[i],
                        preferred_element_type=jnp.float32)
            h = jnp.maximum(h + b_rest_ref[i], 0.0)

        out_ref[pl.ds(r0, sub_rows), :] = h.astype(out_ref.dtype)


def prepare_gin_params(weights, biases, dtype=jnp.float32):
    """One-time parameter prep (hoisted out of the per-forward path).

    weights: list of L arrays, each [F_out, F_in] (PyTorch nn.Linear layout).
    biases:  list of L arrays, each [F_out].
    dtype:   matmul operand dtype (jnp.bfloat16 allowed; accumulation stays f32).
    """
    num_layers = len(weights)
    f_out = weights[0].shape[0]

    w0 = jnp.asarray(weights[0]).T.astype(dtype)            # [F_in, F_out]
    b0 = jnp.asarray(biases[0]).reshape(1, f_out).astype(jnp.float32)
    if num_layers == 1:
        return (w0, b0, None, None)

    w_rest = jnp.stack([jnp.asarray(w).T for w in weights[1:]], axis=0).astype(dtype)
    b_rest = jnp.stack([jnp.asarray(b).reshape(1, f_out) for b in biases[1:]],
                       axis=0).astype(jnp.float32)
    return (w0, b0, w_rest, b_rest)


def _pick_tm(n):
    # Largest row tile that still leaves >= 2 grid steps, so the "parallel"
    # row axis can shard across v7x's two TensorCores.  v5e/v6e (single TC)
    # simply benefit from the larger tile.
    for cand in (1024, 512, 256, 128):
        if pl.cdiv(n, cand) >= 2:
            return cand
    return 128


def gin_layer(g, feature, params, *, tm=None):
    """Fused GINLayer forward.

    g:        ignored (the reference forward never touches the graph).
    feature:  [N, F_in] node features.
    params:   output of prepare_gin_params().
    """
    del g  # The PyTorch forward never uses the graph object.

    w0, b0, w_rest, b_rest = params
    num_layers = 1 if w_rest is None else 1 + w_rest.shape[0]
    n, f_in = feature.shape
    f_out = w0.shape[1]

    if feature.dtype != w0.dtype:
        feature = feature.astype(w0.dtype)
    elem = jnp.dtype(w0.dtype).itemsize

    if tm is None:
        tm = _pick_tm(n)
    sub_rows = min(tm, _SUB_ROWS)
    num_sub = tm // sub_rows
    grid = (pl.cdiv(n, tm),)  # partial last block handled by Pallas (masked store)

    resident = pl.Buffered(1)  # constant-index weights: no double buffer
    inputs = [feature, w0, b0]
    in_specs = [
        pl.BlockSpec((tm, f_in), lambda i: (i, 0)),  # node block (pipelined)
        pl.BlockSpec((f_in, f_out), lambda i: (0, 0), pipeline_mode=resident),
        pl.BlockSpec((1, f_out), lambda i: (0, 0), pipeline_mode=resident),
    ]
    if num_layers > 1:
        inputs += [w_rest, b_rest]
        in_specs += [
            pl.BlockSpec((num_layers - 1, f_out, f_out), lambda i: (0, 0, 0),
                         pipeline_mode=resident),
            pl.BlockSpec((num_layers - 1, 1, f_out), lambda i: (0, 0, 0),
                         pipeline_mode=resident),
        ]

    # Explicit VMEM budget: single-buffered weight stack + double-buffered
    # node in/out blocks, with headroom.  Keeps the tiling honest for v7x's
    # 64 MiB physical VMEM.
    weight_bytes = num_layers * (f_in * f_out * elem + f_out * 4)
    act_bytes = 2 * tm * f_in * elem + 2 * tm * f_out * 4
    vmem_limit = min(48 * 1024 * 1024, 2 * (weight_bytes + act_bytes) + (8 << 20))

    cost = pl.CostEstimate(
        flops=2 * num_layers * n * f_in * f_out,
        transcendentals=0,
        bytes_accessed=n * f_in * elem + n * f_out * 4 + weight_bytes,
    )

    return pl.pallas_call(
        functools.partial(gin_kernel, num_layers, num_sub, sub_rows),
        out_shape=jax.ShapeDtypeStruct((n, f_out), jnp.float32),
        grid=grid,
        in_specs=in_specs,
        out_specs=pl.BlockSpec((tm, f_out), lambda i: (i, 0)),
        compiler_params=pltpu.CompilerParams(
            dimension_semantics=("parallel",),   # row axis shards across TCs
            vmem_limit_bytes=vmem_limit,
        ),
        cost_estimate=cost,
    )(*inputs)


if __name__ == "__main__":
    key = jax.random.PRNGKey(0)

    # Small shapes consistent with the module: 128 features => lane-dense
    # stores and fully-used MXU K; 200 nodes => grid of 2 (exercises the
    # masked partial last block and the v7x megacore split).
    num_nodes = 200
    in_features = 128
    out_features = 128      # must equal in_features for num_layers > 1
    num_layers = 3

    k_x, key = jax.random.split(key)
    feature = jax.random.normal(k_x, (num_nodes, in_features), dtype=jnp.float32)

    g = None  # dummy graph object (unused by the reference forward)

    # PyTorch nn.Linear-style init: uniform in +/- 1/sqrt(in_features).
    bound = 1.0 / (in_features ** 0.5)
    weights, biases = [], []
    for _ in range(num_layers):
        k_w, k_b, key = jax.random.split(key, 3)
        weights.append(
            jax.random.uniform(k_w, (out_features, in_features),
                               minval=-bound, maxval=bound, dtype=jnp.float32))
        biases.append(
            jax.random.uniform(k_b, (out_features,),
                               minval=-bound, maxval=bound, dtype=jnp.float32))

    # One-time parameter prep (transpose/stack hoisted out of the forward).
    params = prepare_gin_params(weights, biases, dtype=jnp.float32)

    fwd = jax.jit(functools.partial(gin_layer, g))
    out = jax.block_until_ready(fwd(feature, params))

    # Pure-JAX reference of the PyTorch forward.
    ref = feature @ weights[0].T + biases[0]
    for i in range(1, num_layers):
        ref = jnp.maximum(ref @ weights[i].T + biases[i], 0.0)

    assert out.shape == (num_nodes, out_features)
    assert jnp.allclose(out, ref, atol=1e-4, rtol=1e-4)

    print("KERNEL_OK")
</pallas_src>

<mosaic_0001>
module attributes {stable_mosaic.version = 11 : i64} {
  func.func @gin_kernel(%arg0: i32, %arg1: memref<128x128xf32, #tpu.memory_space<vmem>>, %arg2: memref<128x128xf32, #tpu.memory_space<vmem>>, %arg3: memref<1x128xf32, #tpu.memory_space<vmem>>, %arg4: memref<2x128x128xf32, #tpu.memory_space<vmem>>, %arg5: memref<2x1x128xf32, #tpu.memory_space<vmem>>, %arg6: memref<128x128xf32, #tpu.memory_space<vmem>>) attributes {dimension_semantics = [#tpu.dimension_semantics<parallel>], iteration_bounds = array<i64: 2>, scalar_prefetch = 0 : i64, scratch_operands = 0 : i64, tpu.core_type = #tpu.core_type<tc>, window_params = [{transform_indices = @transform_0, window_bounds = array<i64: 128, 128>}, {pipeline_mode = #tpu.pipeline_mode<synchronous>, transform_indices = @transform_1, window_bounds = array<i64: 128, 128>}, {pipeline_mode = #tpu.pipeline_mode<synchronous>, transform_indices = @transform_2, window_bounds = array<i64: 1, 128>}, {pipeline_mode = #tpu.pipeline_mode<synchronous>, transform_indices = @transform_3, window_bounds = array<i64: 2, 128, 128>}, {pipeline_mode = #tpu.pipeline_mode<synchronous>, transform_indices = @transform_4, window_bounds = array<i64: 2, 1, 128>}, {transform_indices = @transform_5, window_bounds = array<i64: 128, 128>}]} {
    %c0 = arith.constant 0 : index
    %c0_0 = arith.constant 0 : index
    %0 = vector.load %arg2[%c0, %c0_0] : memref<128x128xf32, #tpu.memory_space<vmem>>, vector<128x128xf32>
    %c0_1 = arith.constant 0 : index
    %c0_2 = arith.constant 0 : index
    %1 = vector.load %arg3[%c0_1, %c0_2] : memref<1x128xf32, #tpu.memory_space<vmem>>, vector<1x128xf32>
    %c0_3 = arith.constant 0 : index
    %c0_4 = arith.constant 0 : index
    %2 = vector.load %arg1[%c0_3, %c0_4] : memref<128x128xf32, #tpu.memory_space<vmem>>, vector<128x128xf32>
    %cst = arith.constant dense<0.000000e+00> : vector<128x128xf32>
    %3 = tpu.matmul %2, %0, %cst {dimension_numbers = #tpu.dot_dimension_numbers<[1], [0], [0], [1], [0, 0, 1, 1], [], []>} : vector<128x128xf32>, vector<128x128xf32>, vector<128x128xf32> -> vector<128x128xf32>
    %4 = vector.broadcast %1 : vector<1x128xf32> to vector<128x128xf32>
    %5 = arith.addf %3, %4 : vector<128x128xf32>
    %c0_5 = arith.constant 0 : index
    %c0_6 = arith.constant 0 : index
    %c0_7 = arith.constant 0 : index
    %6 = vector.load %arg4[%c0_5, %c0_6, %c0_7] : memref<2x128x128xf32, #tpu.memory_space<vmem>>, vector<1x128x128xf32>
    %7 = vector.shape_cast %6 : vector<1x128x128xf32> to vector<128x128xf32>
    %cst_8 = arith.constant dense<0.000000e+00> : vector<128x128xf32>
    %8 = tpu.matmul %5, %7, %cst_8 {dimension_numbers = #tpu.dot_dimension_numbers<[1], [0], [0], [1], [0, 0, 1, 1], [], []>} : vector<128x128xf32>, vector<128x128xf32>, vector<128x128xf32> -> vector<128x128xf32>
    %c0_9 = arith.constant 0 : index
    %c0_10 = arith.constant 0 : index
    %c0_11 = arith.constant 0 : index
    %9 = vector.load %arg5[%c0_9, %c0_10, %c0_11] : memref<2x1x128xf32, #tpu.memory_space<vmem>>, vector<1x1x128xf32>
    %10 = vector.shape_cast %9 : vector<1x1x128xf32> to vector<1x128xf32>
    %11 = vector.broadcast %10 : vector<1x128xf32> to vector<128x128xf32>
    %12 = arith.addf %8, %11 : vector<128x128xf32>
    %cst_12 = arith.constant 0.000000e+00 : f32
    %13 = vector.broadcast %cst_12 : f32 to vector<128x128xf32>
    %14 = arith.maximumf %12, %13 : vector<128x128xf32>
    %c1 = arith.constant 1 : index
    %c0_13 = arith.constant 0 : index
    %c0_14 = arith.constant 0 : index
    %15 = vector.load %arg4[%c1, %c0_13, %c0_14] : memref<2x128x128xf32, #tpu.memory_space<vmem>>, vector<1x128x128xf32>
    %16 = vector.shape_cast %15 : vector<1x128x128xf32> to vector<128x128xf32>
    %cst_15 = arith.constant dense<0.000000e+00> : vector<128x128xf32>
    %17 = tpu.matmul %14, %16, %cst_15 {dimension_numbers = #tpu.dot_dimension_numbers<[1], [0], [0], [1], [0, 0, 1, 1], [], []>} : vector<128x128xf32>, vector<128x128xf32>, vector<128x128xf32> -> vector<128x128xf32>
    %c1_16 = arith.constant 1 : index
    %c0_17 = arith.constant 0 : index
    %c0_18 = arith.constant 0 : index
    %18 = vector.load %arg5[%c1_16, %c0_17, %c0_18] : memref<2x1x128xf32, #tpu.memory_space<vmem>>, vector<1x1x128xf32>
    %19 = vector.shape_cast %18 : vector<1x1x128xf32> to vector<1x128xf32>
    %20 = vector.broadcast %19 : vector<1x128xf32> to vector<128x128xf32>
    %21 = arith.addf %17, %20 : vector<128x128xf32>
    %cst_19 = arith.constant 0.000000e+00 : f32
    %22 = vector.broadcast %cst_19 : f32 to vector<128x128xf32>
    %23 = arith.maximumf %21, %22 : vector<128x128xf32>
    %c0_20 = arith.constant 0 : index
    %c0_21 = arith.constant 0 : index
    %24 = vector.load %arg6[%c0_20, %c0_21] : memref<128x128xf32, #tpu.memory_space<vmem>>, vector<128x128xf32>
    tpu.vector_store %arg6[%c0_20, %c0_21], %23 {strides = array<i32>} : memref<128x128xf32, #tpu.memory_space<vmem>>, vector<128x128xf32>,
    return
  }
  func.func @transform_0(%arg0: i32) -> (i32, i32) {
    %c0_i32 = arith.constant 0 : i32
    %c0_i32_0 = arith.constant 0 : i32
    return %arg0, %c0_i32 : i32, i32
  }
  func.func @transform_1(%arg0: i32) -> (i32, i32) {
    %c0_i32 = arith.constant 0 : i32
    %c0_i32_0 = arith.constant 0 : i32
    %c0_i32_1 = arith.constant 0 : i32
    return %c0_i32, %c0_i32_0 : i32, i32
  }
  func.func @transform_2(%arg0: i32) -> (i32, i32) {
    %c0_i32 = arith.constant 0 : i32
    %c0_i32_0 = arith.constant 0 : i32
    %c0_i32_1 = arith.constant 0 : i32
    return %c0_i32, %c0_i32_0 : i32, i32
  }
  func.func @transform_3(%arg0: i32) -> (i32, i32, i32) {
    %c0_i32 = arith.constant 0 : i32
    %c0_i32_0 = arith.constant 0 : i32
    %c0_i32_1 = arith.constant 0 : i32
    %c0_i32_2 = arith.constant 0 : i32
    return %c0_i32, %c0_i32_0, %c0_i32_1 : i32, i32, i32
  }
  func.func @transform_4(%arg0: i32) -> (i32, i32, i32) {
    %c0_i32 = arith.constant 0 : i32
    %c0_i32_0 = arith.constant 0 : i32
    %c0_i32_1 = arith.constant 0 : i32
    %c0_i32_2 = arith.constant 0 : i32
    return %c0_i32, %c0_i32_0, %c0_i32_1 : i32, i32, i32
  }
  func.func @transform_5(%arg0: i32) -> (i32, i32) {
    %c0_i32 = arith.constant 0 : i32
    %c0_i32_0 = arith.constant 0 : i32
    return %arg0, %c0_i32 : i32, i32
  }
}

</mosaic_0001>

<bundles_post_ra>
// kernel: gin_layer.1
= control target key start
LH: loop header
LB: loop body
LE: loop exit
PB: predicated region body
PF: predicated region fallthrough
CT: control target
= control target key end

     0   :  { %10 = vsyncpa [#allocation3], 0  ;;  %s1935_s0 = inlined_call_operand.hbm [shape: f32[200,128], index: 0, kind: input, shape index: {}]   ;;  %s1936_s1 = inlined_call_operand.hbm [shape: f32[128,128], index: 1, kind: input, shape index: {}]   ;;  %s1937_s2 = inlined_call_operand.vmem [shape: f32[1,128], index: 2, kind: input, shape index: {}]   ;;  %s1938_s3 = inlined_call_operand.hbm [shape: f32[2,128,128], index: 3, kind: input, shape index: {}]   ;;  %s1939_s4 = inlined_call_operand.vmem [shape: f32[2,1,128], index: 4, kind: input, shape index: {}]   ;;  %s1940_s5 = inlined_call_operand.hbm [shape: f32[200,128], index: 5, kind: output, shape index: {}]  }
   0x1   :  { %12 = vsyncpa [#allocation3 + $0x1], 0 }
   0x2   :  { %13 = vsyncpa [#allocation6], 0 }
   0x3   :  { %14 = vsyncpa [#allocation4], 0 }
   0x4   :  { %16 = vsyncpa [#allocation4 + $0x1], 0  ;;  %s1640_s18 = smov 0   ;;  %s1642_s19 = smov 0  }
   0x5   :  { %s1644_s20 = smov 0   ;;  %s1646_s21 = smov 0  }
   0x6 LB: > { %s1661_s22 = sadd.s32 4294967295, %s1598_s21   ;;  %s970_s23 = sadd.s32 4294967294, %s1598_s21   ;;  %s1598_s21 = sphi %s1646_s21, %s1962_s21   ;;  %s1594_s20 = sphi %s1644_s20, %s1961_s20   ;;  %s1590_s19 = sphi %s1642_s19, %s1960_s19   ;;  %s1586_s18 = sphi %s1640_s18, %s1959_s18  }
   0x7   : > { %s1665_s24 = sadd.s32 1, %s1598_s21   ;;  %s29_s25 = sadd.s32 1, %s1594_s20 }
   0x8   : > { %s26_s26 = ssub.s32 %s1598_s21, %s1665_s24  ;;  %p36_p0 = scmp.ne.s32.totalorder %s1594_s20, %s1590_s19 }
   0x9   : > { %p27_p1 = scmp.eq.s32.totalorder %s26_s26, 0  ;;  %p37_p2 = scmp.eq.s32.totalorder %s1598_s21, 0 }
   0xa   : > { %p42_p3 = scmp.ne.s32.totalorder %s1590_s19, %s1586_s18  ;;  %p1941_p4 = scmp.eq.s32.totalorder %s1661_s22, 0 }
   0xb   : > { %s1677_s27 = scalar_select %p27_p1, %s1594_s20, %s29_s25  }
   0xc   : > { %p1679_p5 = por %p37_p2, %p36_p0  ;;  %p1685_p6 = por %p1941_p4, %p42_p3 }
   0xd   : > { %1944 = sst [smem:[#allocation12_spill]] %s1677_s27  ;;  %p150_p7 = scmp.eq.s32.totalorder %s1661_s22, 1 }
   0xe   : > { %s1945_s28 = scalar_select %p1679_p5, 1, 0 }
   0xf   : > { %s1946_s29 = scalar_select %p1685_p6, 1, 0 }
  0x10   : > { %p156_p8 = scmp.eq.s32.totalorder %s970_s23, 1  ;;  %p971_p9 = scmp.ge.s32.totalorder %s1598_s21, 1 }
  0x11   : > { %p163_p10 = scmp.lt.s32.totalorder %s1598_s21, 3  ;;  %p1692_p11 = por %p150_p7, %p36_p0 }
  0x12   : > { %p1696_p12 = por %p156_p8, %p42_p3  ;;  %s1600_s8 = smov [#allocation5]  }
  0x13   : > { %s1947_s30 = scalar_select %p1692_p11, 1, 0 }
  0x14   : > { %s1948_s6 = scalar_select %p1696_p12, 1, 0 }
  0x15   : > { %p1700_p13 = pnand %p971_p9, %p163_p10  ;;  %s175_s9 = sshll.u32 %s1600_s8, 4  ;;  %s176_s9 = int_to_ptr.vmem [resolvable:$true] %s175_s9 }
  0x16   : > { %s1601_s11 = smov [#allocation7]   ;;  %s1444_s15 = scalar_lea.hbm %s1936_s1, 2048 }
  0x17   : > { %s1949_s7 = scalar_select %p1700_p13, 1, 0 }
  0x18   : > { %p1388_p1 = pneg %p1700_p13  ;;  %s191_s12 = sshll.u32 %s1601_s11, 4  ;;  %s1712_s12 = int_to_ptr.vmem [resolvable:$true] %s191_s12 }
  0x19   : > { %p1445_p0 = scmp.ne.s32.totalorder %s1936_s1, %s1444_s15  ;;  %p1451_p9 = scmp.lt.u32.totalorder %s1444_s15, %s1936_s1 }
  0x1a   : > { %p1708_p2 = pnand %p1388_p1, %p1941_p4 }
  0x1c   : > { %p1446_p3 = pneg %p1708_p2 }
  0x1e   : > { %p1447_p7 = pnand %p1446_p3, %p1445_p0 }
  0x20   : > { %p1448_p8 = pneg %p1447_p7 }
  0x22   : > { %p1453_p10 = pnand %p1451_p9, %p1448_p8 }
  0x24   : > { %1456 = shalt.err (!%p1453_p10)
}
  0x25   : > { %s1457_s26 = scalar_lea.vmem %s176_s9, 2048  ;;  %p1465_p11 = scmp.lt.s32.totalorder %s176_s9, %s176_s9 }
  0x26   : > { %p1458_p1 = scmp.ne.s32.totalorder %s176_s9, %s1457_s26  ;;  %p1466_p6 = scmp.lt.s32.totalorder %s1457_s26, %s1457_s26 }
  0x28   : > { %p1460_p4 = pnand %p1458_p1, %p1446_p3  ;;  %p1467_p13 = por %p1466_p6, %p1465_p11 }
  0x2a   : > { %p1461_p12 = pneg %p1460_p4 }
  0x2c   : > { %p1468_p5 = pnand %p1467_p13, %p1461_p12 }
  0x2e   : > { %1471 = shalt.err (!%p1468_p5)
}
  0x2f   : > { %s1602_s8 = smov 128   ;;  %s1603_s11 = smov 8  }
  0x30   : > { %1391 = dma.hbm_to_vmem [thread:$0]  (!%p1708_p2), %s1936_s1, 2048, %s176_s9, [#allocation6], %s1602_s8, %s1602_s8, %s1603_s11  }
  0x31   : > { %s1472_s17 = scalar_lea.hbm %s1938_s3, 4096 }
  0x32   : > { %p1473_p4 = scmp.ne.s32.totalorder %s1938_s3, %s1472_s17  ;;  %p1479_p11 = scmp.lt.u32.totalorder %s1472_s17, %s1938_s3 }
  0x34   : > { %p1475_p5 = pnand %p1473_p4, %p1446_p3 }
  0x36   : > { %p1476_p6 = pneg %p1475_p5 }
  0x38   : > { %p1481_p12 = pnand %p1479_p11, %p1476_p6 }
  0x3a   : > { %1484 = shalt.err (!%p1481_p12)
}
  0x3b   : > { %s1485_s9 = scalar_lea.vmem %s1712_s12, 4096  ;;  %p1493_p8 = scmp.lt.s32.totalorder %s1712_s12, %s1712_s12 }
  0x3c   : > { %p1486_p13 = scmp.ne.s32.totalorder %s1712_s12, %s1485_s9  ;;  %p1494_p9 = scmp.lt.s32.totalorder %s1485_s9, %s1485_s9 }
  0x3e   : > { %p1488_p0 = pnand %p1486_p13, %p1446_p3  ;;  %p1495_p10 = por %p1494_p9, %p1493_p8 }
  0x40   : > { %p1489_p7 = pneg %p1488_p0 }
  0x42   : > { %p1496_p1 = pnand %p1495_p10, %p1489_p7 }
  0x44   : > { %1499 = shalt.err (!%p1496_p1)
}
  0x45   : > { %1394 = dma.hbm_to_vmem [thread:$0]  (!%p1708_p2), %s1938_s3, 4096, %s1712_s12, [#allocation6], %s1602_s8, %s1602_s8, %s1603_s11  }
  0x46   : > { %p974_p4 = scmp.ge.s32.totalorder %s1598_s21, 2 }
  0x47   : > { %p1951_p3 = scmp.ne.s32.totalorder (!%p974_p4), %s1945_s28, 0 }
  0x48   : > { %204 = sbr.rel (%p974_p4) target bundleno = 114 (0x72), region = 32 }
  0x4f   : > { %207 = sbr.rel (!%p1951_p3) target bundleno = 114 (0x72), region = 36  ;;  %s208_s14 = sand.u32 (%p1951_p3), 1, %s1594_s20  }
  0x50   : > { %s976_s15 = sshll.u32 (%p1951_p3), %s1598_s21, 4  ;;  %s975_s16 = sshll.u32 (%p1951_p3), %s208_s14, 7 }
  0x51   : > { %s214_s17 = ssub.s32 (%p1951_p3), 25, %s976_s15  ;;  %s1771_s8 = scalar_lea.sflag (%p1951_p3), [#allocation3], %s208_s14 }
  0x52   : > { %p215_p5 = scmp.lt.s32.totalorder (%p1951_p3), %s214_s17, 16  ;;  %s212_s11 = scalar_lea.vmem (%p1951_p3), [#allocation2], %s975_s16 }
  0x56   : > { %s1964_s17 = smov (!%p215_p5, %s214_s17), 16 }
  0x57   : > { %s1768_s10 = sshll.u32 %s1964_s17, 7 }
  0x58   : > { %s219_s12 = ssub.s32 2048, %s1768_s10 }
  0x59   : > { %220 = vsyncadd %s1771_s8, %s219_s12  ;;  %p978_p2 = scmp.ne.s32.totalorder %s1768_s10, 0  ;;  %s1000_s28 = sshll.u32 %s1598_s21, 11 }
  0x5a   : > { %s1779_s26 = scalar_lea.hbm %s1935_s0, %s1000_s28  ;;  %s225_s9 = sshll.u32 %s212_s11, 4  ;;  %s1781_s9 = int_to_ptr.vmem [resolvable:$true] %s225_s9 }
  0x5b   : > { %s1500_s27 = scalar_lea.hbm %s1779_s26, %s1768_s10  ;;  %s1504_s15 = scalar_lea.hbm %s1935_s0, 3200 }
  0x5c   : > { %p1501_p6 = scmp.ne.s32.totalorder %s1779_s26, %s1500_s27  ;;  %p1505_p13 = scmp.lt.u32.totalorder %s1779_s26, %s1935_s0 }
  0x5d   : > { %p1506_p0 = scmp.lt.u32.totalorder %s1504_s15, %s1500_s27  ;;  %p1508_p8 = scmp.lt.u32.totalorder %s1500_s27, %s1779_s26 }
  0x5e   : > { %p1502_p11 = pnand %p1501_p6, %p978_p2 }
  0x5f   : > { %p1507_p7 = por %p1506_p0, %p1505_p13 }
  0x60   : > { %p1503_p12 = pneg %p1502_p11 }
  0x61   : > { %p1509_p9 = por %p1508_p8, %p1507_p7 }
  0x63   : > { %p1510_p10 = pnand %p1509_p9, %p1503_p12 }
  0x65   : > { %1513 = shalt.err (!%p1510_p10)
}
  0x66   : > { %s1514_s12 = scalar_lea.vmem %s1781_s9, %s1768_s10  ;;  %s1604_s11 = smov [#allocation2]  }
  0x67   : > { %p1515_p1 = scmp.ne.s32.totalorder %s1781_s9, %s1514_s12  ;;  %s1518_s28 = sshll.u32 %s1604_s11, 4  ;;  %s1519_s28 = int_to_ptr.vmem [resolvable:$false] %s1518_s28 }
  0x68   : > { %s1520_s23 = scalar_lea.vmem %s1519_s28, 4096  ;;  %p1521_p6 = scmp.lt.s32.totalorder %s1781_s9, %s1519_s28 }
  0x69   : > { %p1516_p3 = pnand %p1515_p1, %p978_p2  ;;  %p1522_p11 = scmp.lt.s32.totalorder %s1520_s23, %s1514_s12 }
  0x6b   : > { %p1517_p5 = pneg %p1516_p3  ;;  %p1523_p13 = por %p1522_p11, %p1521_p6 }
  0x6d   : > { %p1524_p0 = pnand %p1523_p13, %p1517_p5 }
  0x6f   : > { %1527 = shalt.err (!%p1524_p0)
}
  0x70   : > { %s1605_s25 = smov 128   ;;  %s1606_s27 = smov 8  }
  0x71   : > { %231 = dma.hbm_to_vmem [thread:$0]  (%p978_p2), %s1779_s26, %s1768_s10, %s1781_s9, %s1771_s8, %s1605_s25, %s1605_s25, %s1606_s27  }
  0x72 PF: > { %p1952_p12 = scmp.ne.s32.totalorder %s1949_s7, 0 }
  0x73   : > { %s1811_s13 = sand.u32 (!%p1952_p12), 1, %s1590_s19   ;;  %p1953_p7 = scmp.ne.s32.totalorder (!%p1952_p12), %s1946_s29, 0 }
  0x74   : > { %237 = sbr.rel (%p1952_p12) target bundleno = 870 (0x366), region = 40  ;;  %s983_s14 = sshll.u32 (!%p1952_p12), %s1811_s13, 7 }
  0x75   : > { %s240_s15 = scalar_lea.sflag (!%p1952_p12), [#allocation3], %s1811_s13  ;;  %s1817_s16 = scalar_lea.vmem (!%p1952_p12), [#allocation2], %s983_s14 }
  0x7b   : > { %1573 = dma.done.wait (%p1953_p7), %s240_s15, 2048  }
  0x7c   : > { %1575 = vsyncadd (%p1953_p7), %s240_s15, 4294965248  ;;  %p1954_p2 = scmp.eq.s32.totalorder %s1661_s22, 0 }
  0x7e   : > { %1577 = dma.done.wait (%p1954_p2), [#allocation6], 6144   ;;  %p1955_p8 = pmov %p1954_p2 }
  0x7f   : > { %v288_v0 = vld [vmem:[#allocation5] sm:$0xff]  ;;  %v289_v1 = vld [vmem:[#allocation5 + $0x8] sm:$0xff]  ;;  %v290_v2 = vld [vmem:[#allocation5 + $0x10] sm:$0xff]  ;;  %s1854_s17 = scalar_lea.vmem [#allocation8], %s983_s14  ;;  %s859_s12 = scalar_lea.sflag [#allocation4], %s1811_s13 }
  0x80   : > { %1579 = vsyncadd (%p1955_p8), [#allocation6], 4294961152  ;;  %v1266_v3 = vpack.c.bf16 %v289_v1, %v288_v0  ;;  %v291_v4 = vld [vmem:[#allocation5 + $0x18] sm:$0xff]  ;;  %v292_v6 = vld [vmem:[#allocation5 + $0x20] sm:$0xff]  ;;  %p1956_p9 = scmp.ne.s32.totalorder %s1947_s30, 0 }
  0x81   : > { %v1270_v5 = vpack.c.bf16 %v291_v4, %v290_v2  ;;  %v293_v7 = vld [vmem:[#allocation5 + $0x28] sm:$0xff]  ;;  %v305_v9 = vld [vmem:[%s1817_s16] sm:$0xff]  ;;  %v294_v10 = vld [vmem:[#allocation5 + $0x30] sm:$0xff]  ;;  %s992_s11 = sshll.u32 (%p1956_p9), %s1661_s22, 4 }
  0x82   : > { %1267 = vmatprep.subr.bf16.mxu0 %v1266_v3  ;;  %v1274_v8 = vpack.c.bf16 %v293_v7, %v292_v6  ;;  %v295_v11 = vld [vmem:[#allocation5 + $0x38] sm:$0xff]  ;;  %1130 = vmatprep.mubr.f32.mxu0 %v305_v9  ;;  %v296_v13 = vld [vmem:[#allocation5 + $0x40] sm:$0xff]  ;;  %v297_v14 = vld [vmem:[#allocation5 + $0x48] sm:$0xff]  ;;  %s867_s28 = ssub.s32 (%p1956_p9), 25, %s992_s11 }
  0x83   : > { %1269 = vmatpush3.bf16.msra.mxu0 %v1266_v3  ;;  %v1278_v12 = vpack.c.bf16 %v295_v11, %v294_v10  ;;  %v472_v15 = vld [vmem:[#allocation7] sm:$0xff]  ;;  %v473_v16 = vld [vmem:[#allocation7 + $0x8] sm:$0xff]  ;;  %v474_v17 = vld [vmem:[#allocation7 + $0x10] sm:$0xff]  ;;  %v1282_v21 = vpack.c.bf16 %v297_v14, %v296_v13  ;;  %p868_p10 = scmp.lt.s32.totalorder (%p1956_p9), %s867_s28, 16 }
  0x84   : > { %1271 = vmatprep.subr.bf16.mxu0 %v1270_v5  ;;  %v475_v18 = vld [vmem:[#allocation7 + $0x18] sm:$0xff]  ;;  %v1298_v19 = vpack.c.bf16 %v473_v16, %v472_v15  ;;  %v476_v22 = vld [vmem:[#allocation7 + $0x20] sm:$0xff]  ;;  %v477_v23 = vld [vmem:[#allocation7 + $0x28] sm:$0xff] }
  0x85   : > { %v1302_v20 = vpack.c.bf16 %v475_v18, %v474_v17  ;;  %v298_v24 = vld [vmem:[#allocation5 + $0x50] sm:$0xff]  ;;  %v299_v25 = vld [vmem:[#allocation5 + $0x58] sm:$0xff]  ;;  %v1306_v26 = vpack.c.bf16 %v477_v23, %v476_v22  ;;  %v300_v30 = vld [vmem:[#allocation5 + $0x60] sm:$0xff] }
  0x86   : > { %1299 = vmatprep.subr.bf16.mxu1 %v1298_v19  ;;  %v1286_v27 = vpack.c.bf16 %v299_v25, %v298_v24  ;;  %v478_v28 = vld [vmem:[#allocation7 + $0x30] sm:$0xff]  ;;  %v479_v29 = vld [vmem:[#allocation7 + $0x38] sm:$0xff]  ;;  %v301_v31 = vld [vmem:[#allocation5 + $0x68] sm:$0xff] }
  0x87   : > { %1273 = vmatpush3.bf16.msra.mxu0 %v1270_v5  ;;  %1301 = vmatpush3.bf16.msra.mxu1 %v1298_v19  ;;  %v1310_v32 = vpack.c.bf16 %v479_v29, %v478_v28  ;;  %v1290_v33 = vpack.c.bf16 %v301_v31, %v300_v30  ;;  %v480_v34 = vld [vmem:[#allocation7 + $0x40] sm:$0xff]  ;;  %v481_v35 = vld [vmem:[#allocation7 + $0x48] sm:$0xff]  ;;  %v302_v36 = vld [vmem:[#allocation5 + $0x70] sm:$0xff] }
  0x88   : > { %1275 = vmatprep.subr.bf16.mxu0 %v1274_v8  ;;  %1303 = vmatprep.subr.bf16.mxu1 %v1302_v20  ;;  %v303_v37 = vld [vmem:[#allocation5 + $0x78] sm:$0xff]  ;;  %v1314_v38 = vpack.c.bf16 %v481_v35, %v480_v34  ;;  %v482_v40 = vld [vmem:[#allocation7 + $0x50] sm:$0xff]  ;;  %v484_v43 = vld [vmem:[#allocation7 + $0x60] sm:$0xff] }
  0x89   : > { %v1294_v39 = vpack.c.bf16 %v303_v37, %v302_v36  ;;  %v483_v41 = vld [vmem:[#allocation7 + $0x58] sm:$0xff]  ;;  %v485_v44 = vld [vmem:[#allocation7 + $0x68] sm:$0xff]  ;;  %v307_v47 = vld [vmem:[%s1817_s16 + $0x10] sm:$0xff] }
  0x8a   : > { %v1318_v42 = vpack.c.bf16 %v483_v41, %v482_v40  ;;  %v306_v45 = vld [vmem:[%s1817_s16 + $0x8] sm:$0xff]  ;;  %v1322_v46 = vpack.c.bf16 %v485_v44, %v484_v43  ;;  %v308_v48 = vld [vmem:[%s1817_s16 + $0x18] sm:$0xff]  ;;  %v309_v49 = vld [vmem:[%s1817_s16 + $0x20] sm:$0xff] }
  0x8b   : > { %1277 = vmatpush3.bf16.msra.mxu0 %v1274_v8  ;;  %1305 = vmatpush3.bf16.msra.mxu1 %v1302_v20  ;;  %v310_v50 = vld [vmem:[%s1817_s16 + $0x28] sm:$0xff]  ;;  %v311_v51 = vld [vmem:[%s1817_s16 + $0x30] sm:$0xff]  ;;  %v312_v52 = vld [vmem:[%s1817_s16 + $0x38] sm:$0xff] }
  0x8c   : > { %1279 = vmatprep.subr.bf16.mxu0 %v1278_v12  ;;  %1307 = vmatprep.subr.bf16.mxu1 %v1306_v26  ;;  %v313_v53 = vld [vmem:[%s1817_s16 + $0x40] sm:$0xff]  ;;  %v314_v54 = vld [vmem:[%s1817_s16 + $0x48] sm:$0xff]  ;;  %v315_v55 = vld [vmem:[%s1817_s16 + $0x50] sm:$0xff] }
  0x8d   : > { %v316_v56 = vld [vmem:[%s1817_s16 + $0x58] sm:$0xff]  ;;  %v317_v57 = vld [vmem:[%s1817_s16 + $0x60] sm:$0xff]  ;;  %v318_v58 = vld [vmem:[%s1817_s16 + $0x68] sm:$0xff] }
  0x8e   : > { %v319_v59 = vld [vmem:[%s1817_s16 + $0x70] sm:$0xff]  ;;  %v320_v60 = vld [vmem:[%s1817_s16 + $0x78] sm:$0xff]  ;;  %v657_v0 = vld [vmem:[#allocation7 + $0x80] sm:$0xff] }
  0x8f   : > { %1281 = vmatpush3.bf16.msra.mxu0 %v1278_v12  ;;  %1309 = vmatpush3.bf16.msra.mxu1 %v1306_v26  ;;  %v486_v61 = vld [vmem:[#allocation7 + $0x70] sm:$0xff]  ;;  %v487_v62 = vld [vmem:[#allocation7 + $0x78] sm:$0xff]  ;;  %v658_v1 = vld [vmem:[#allocation7 + $0x88] sm:$0xff] }
  0x90   : > { %1283 = vmatprep.subr.bf16.mxu0 %v1282_v21  ;;  %1311 = vmatprep.subr.bf16.mxu1 %v1310_v32  ;;  %v1326_v63 = vpack.c.bf16 %v487_v62, %v486_v61  ;;  %v659_v2 = vld [vmem:[#allocation7 + $0x90] sm:$0xff]  ;;  %v1330_v3 = vpack.c.bf16 %v658_v1, %v657_v0  ;;  %v660_v4 = vld [vmem:[#allocation7 + $0x98] sm:$0xff]  ;;  %v661_v6 = vld [vmem:[#allocation7 + $0xa0] sm:$0xff] }
  0x91   : > { %v1334_v5 = vpack.c.bf16 %v660_v4, %v659_v2  ;;  %v662_v7 = vld [vmem:[#allocation7 + $0xa8] sm:$0xff]  ;;  %v663_v9 = vld [vmem:[#allocation7 + $0xb0] sm:$0xff]  ;;  %v664_v10 = vld [vmem:[#allocation7 + $0xb8] sm:$0xff] }
  0x92   : > { %v1338_v8 = vpack.c.bf16 %v662_v7, %v661_v6  ;;  %v1342_v11 = vpack.c.bf16 %v664_v10, %v663_v9  ;;  %v665_v12 = vld [vmem:[#allocation7 + $0xc0] sm:$0xff]  ;;  %v666_v13 = vld [vmem:[#allocation7 + $0xc8] sm:$0xff]  ;;  %v667_v15 = vld [vmem:[#allocation7 + $0xd0] sm:$0xff] }
  0x93   : > { %1285 = vmatpush3.bf16.msra.mxu0 %v1282_v21  ;;  %1313 = vmatpush3.bf16.msra.mxu1 %v1310_v32  ;;  %v1346_v14 = vpack.c.bf16 %v666_v13, %v665_v12  ;;  %v668_v16 = vld [vmem:[#allocation7 + $0xd8] sm:$0xff]  ;;  %v669_v18 = vld [vmem:[#allocation7 + $0xe0] sm:$0xff]  ;;  %v670_v19 = vld [vmem:[#allocation7 + $0xe8] sm:$0xff] }
  0x94   : > { %1287 = vmatprep.subr.bf16.mxu0 %v1286_v27  ;;  %1315 = vmatprep.subr.bf16.mxu1 %v1314_v38  ;;  %v1350_v17 = vpack.c.bf16 %v668_v16, %v667_v15  ;;  %v1354_v20 = vpack.c.bf16 %v670_v19, %v669_v18  ;;  %v987_v21 = vld [vmem:[%s1937_s2] ss:$0 sm:$0xff] }
  0x97   : > { %1289 = vmatpush3.bf16.msra.mxu0 %v1286_v27  ;;  %1317 = vmatpush3.bf16.msra.mxu1 %v1314_v38 }
  0x98   : > { %1291 = vmatprep.subr.bf16.mxu0 %v1290_v33  ;;  %1319 = vmatprep.subr.bf16.mxu1 %v1318_v42 }
  0x9b   : > { %1293 = vmatpush3.bf16.msra.mxu0 %v1290_v33  ;;  %1321 = vmatpush3.bf16.msra.mxu1 %v1318_v42 }
  0x9c   : > { %1295 = vmatprep.subr.bf16.mxu0 %v1294_v39  ;;  %1323 = vmatprep.subr.bf16.mxu1 %v1322_v46 }
  0x9f   : > { %1297 = vmatpush3.bf16.msra.mxu0 %v1294_v39  ;;  %1325 = vmatpush3.bf16.msra.mxu1 %v1322_v46 }
  0xa0   : > { %1327 = vmatprep.subr.bf16.mxu1 %v1326_v63  ;;  %1331 = vmatprep.subr.bf16.mxu0 %v1330_v3 }
  0xa2   : > { %1131 = vmatmul.mubr.f32.vlgmr.msra.gmra.mrb[0].mxu0 %v306_v45 }
  0xa3   : > { %1133 = vmatprep.mubr.f32.mxu0 %v307_v47  ;;  %1329 = vmatpush3.bf16.msra.mxu1 %v1326_v63 }
  0xa4   : > { %1362 = vmatprep.subr.bf16.mxu1 %v1330_v3  ;;  %1333 = vmatpush3.bf16.msra.mxu0 %v1330_v3 }
  0xa5   : > { %1335 = vmatprep.subr.bf16.mxu0 %v1334_v5 }
  0xa6   : > { %1134 = vmatmul.mubr.f32.gmra.mrb[2].mxu0 %v308_v48 }
  0xa7   : > { %1136 = vmatprep.mubr.f32.mxu0 %v309_v49 }
  0xa8   : > { %1337 = vmatpush3.bf16.msra.mxu0 %v1334_v5 }
  0xa9   : > { %1339 = vmatprep.subr.bf16.mxu0 %v1338_v8 }
  0xaa   : > { %1137 = vmatmul.mubr.f32.gmra.mrb[4].mxu0 %v310_v50 }
  0xab   : > { %1139 = vmatprep.mubr.f32.mxu0 %v311_v51 }
  0xac   : > { %1341 = vmatpush3.bf16.msra.mxu0 %v1338_v8 }
  0xad   : > { %1343 = vmatprep.subr.bf16.mxu0 %v1342_v11 }
  0xae   : > { %1140 = vmatmul.mubr.f32.gmra.mrb[6].mxu0 %v312_v52 }
  0xaf   : > { %1142 = vmatprep.mubr.f32.mxu0 %v313_v53 }
  0xb0   : > { %1345 = vmatpush3.bf16.msra.mxu0 %v1342_v11 }
  0xb1   : > { %1347 = vmatprep.subr.bf16.mxu0 %v1346_v14 }
  0xb2   : > { %1143 = vmatmul.mubr.f32.gmra.mrb[8].mxu0 %v314_v54  ;;  %v671_v54 = vld [vmem:[#allocation7 + $0xf0] sm:$0xff] }
  0xb3   : > { %1145 = vmatprep.mubr.f32.mxu0 %v315_v55  ;;  %v672_v55 = vld [vmem:[#allocation7 + $0xf8] sm:$0xff] }
  0xb4   : > { %1349 = vmatpush3.bf16.msra.mxu0 %v1346_v14 }
  0xb5   : > { %1351 = vmatprep.subr.bf16.mxu0 %v1350_v17 }
  0xb6   : > { %1146 = vmatmul.mubr.f32.gmra.mrb[10].mxu0 %v316_v56  ;;  %v1358_v56 = vpack.c.bf16 %v672_v55, %v671_v54 }
  0xb7   : > { %1148 = vmatprep.mubr.f32.mxu0 %v317_v57  ;;  %v988_v57 = vld [vmem:[%s1939_s4] ss:$0 sm:$0xff] }
  0xb8   : > { %1353 = vmatpush3.bf16.msra.mxu0 %v1350_v17 }
  0xb9   : > { %1355 = vmatprep.subr.bf16.mxu0 %v1354_v20 }
  0xba   : > { %1149 = vmatmul.mubr.f32.gmra.mrb[12].mxu0 %v318_v58 }
  0xbb   : > { %1151 = vmatprep.mubr.f32.mxu0 %v319_v59 }
  0xbc   : > { %1357 = vmatpush3.bf16.msra.mxu0 %v1354_v20 }
  0xbd   : > { %1359 = vmatprep.subr.bf16.mxu0 %v1358_v56 }
  0xbe   : > { %1152 = vmatmul.mubr.f32.gmra.mrb[14].mxu0 %v320_v60 }
  0xc0   : > { %1361 = vmatpush3.bf16.msra.mxu0 %v1358_v56 }
 0x175   : > { %v1132_v22 = vpop.f32.mrb[0].mxu0 }
 0x176   : > { %v393_v23 = vpop.f32.mrb[1].mxu0  ;;  %v399_v25 = vadd.f32 %v1132_v22, %v987_v21 }
 0x177   : > { %v394_v24 = vadd.f32 %v987_v21, %v393_v23 }
 0x179   : > { %v1135_v26 = vpop.f32.mrb[2].mxu0  ;;  %1186 = vmatprep.mubr.f32.mxu1 %v394_v24 }
 0x17a   : > { %v403_v27 = vpop.f32.mrb[3].mxu0  ;;  %1187 = vmatmul.mubr.f32.vlgmr.msra.gmra.mrb[0].mxu1 %v399_v25  ;;  %v409_v29 = vadd.f32 %v1135_v26, %v987_v21 }
 0x17b   : > { %v404_v28 = vadd.f32 %v987_v21, %v403_v27  ;;  %1370 = vmatpush3.bf16.msra.mxu1 %v1330_v3 }
 0x17c   : > { %1363 = vmatprep.subr.bf16.mxu1 %v1334_v5 }
 0x17d   : > { %v1138_v30 = vpop.f32.mrb[4].mxu0  ;;  %1189 = vmatprep.mubr.f32.mxu1 %v404_v28 }
 0x17e   : > { %v413_v31 = vpop.f32.mrb[5].mxu0  ;;  %1190 = vmatmul.mubr.f32.gmra.mrb[2].mxu1 %v409_v29  ;;  %v419_v33 = vadd.f32 %v1138_v30, %v987_v21 }
 0x17f   : > { %v414_v32 = vadd.f32 %v987_v21, %v413_v31  ;;  %1371 = vmatpush3.bf16.msra.mxu1 %v1334_v5 }
 0x180   : > { %1364 = vmatprep.subr.bf16.mxu1 %v1338_v8 }
 0x181   : > { %v1141_v34 = vpop.f32.mrb[6].mxu0  ;;  %1192 = vmatprep.mubr.f32.mxu1 %v414_v32 }
 0x182   : > { %v423_v35 = vpop.f32.mrb[7].mxu0  ;;  %1193 = vmatmul.mubr.f32.gmra.mrb[4].mxu1 %v419_v33  ;;  %v429_v37 = vadd.f32 %v1141_v34, %v987_v21 }
 0x183   : > { %v424_v36 = vadd.f32 %v987_v21, %v423_v35  ;;  %1372 = vmatpush3.bf16.msra.mxu1 %v1338_v8 }
 0x184   : > { %1365 = vmatprep.subr.bf16.mxu1 %v1342_v11 }
 0x185   : > { %v1144_v38 = vpop.f32.mrb[8].mxu0  ;;  %1195 = vmatprep.mubr.f32.mxu1 %v424_v36 }
 0x186   : > { %v433_v39 = vpop.f32.mrb[9].mxu0  ;;  %1196 = vmatmul.mubr.f32.gmra.mrb[6].mxu1 %v429_v37  ;;  %v439_v41 = vadd.f32 %v1144_v38, %v987_v21 }
 0x187   : > { %v434_v40 = vadd.f32 %v987_v21, %v433_v39  ;;  %1373 = vmatpush3.bf16.msra.mxu1 %v1342_v11 }
 0x188   : > { %1366 = vmatprep.subr.bf16.mxu1 %v1346_v14 }
 0x189   : > { %v1147_v42 = vpop.f32.mrb[10].mxu0  ;;  %1198 = vmatprep.mubr.f32.mxu1 %v434_v40 }
 0x18a   : > { %v443_v43 = vpop.f32.mrb[11].mxu0  ;;  %1199 = vmatmul.mubr.f32.gmra.mrb[8].mxu1 %v439_v41  ;;  %v449_v45 = vadd.f32 %v1147_v42, %v987_v21  ;;  %v990_v42 = vld [vmem:[%s1939_s4 + $0x1] ss:$0 sm:$0xff] }
 0x18b   : > { %v444_v44 = vadd.f32 %v987_v21, %v443_v43  ;;  %1374 = vmatpush3.bf16.msra.mxu1 %v1346_v14 }
 0x18c   : > { %1367 = vmatprep.subr.bf16.mxu1 %v1350_v17 }
 0x18d   : > { %v1150_v46 = vpop.f32.mrb[12].mxu0  ;;  %1201 = vmatprep.mubr.f32.mxu1 %v444_v44 }
 0x18e   : > { %v453_v47 = vpop.f32.mrb[13].mxu0  ;;  %1202 = vmatmul.mubr.f32.gmra.mrb[10].mxu1 %v449_v45  ;;  %v459_v49 = vadd.f32 %v1150_v46, %v987_v21 }
 0x18f   : > { %v454_v48 = vadd.f32 %v987_v21, %v453_v47  ;;  %1375 = vmatpush3.bf16.msra.mxu1 %v1350_v17 }
 0x190   : > { %1368 = vmatprep.subr.bf16.mxu1 %v1354_v20 }
 0x191   : > { %v1153_v50 = vpop.f32.mrb[14].mxu0  ;;  %1204 = vmatprep.mubr.f32.mxu1 %v454_v48 }
 0x192   : > { %v463_v51 = vpop.f32.mrb[15].mxu0  ;;  %1205 = vmatmul.mubr.f32.gmra.mrb[12].mxu1 %v459_v49  ;;  %v469_v53 = vadd.f32 %v1153_v50, %v987_v21 }
 0x193   : > { %v464_v52 = vadd.f32 %v987_v21, %v463_v51  ;;  %1376 = vmatpush3.bf16.msra.mxu1 %v1354_v20 }
 0x194   : > { %1369 = vmatprep.subr.bf16.mxu1 %v1358_v56 }
 0x195   : > { %1207 = vmatprep.mubr.f32.mxu1 %v464_v52 }
 0x196   : > { %1208 = vmatmul.mubr.f32.gmra.mrb[14].mxu1 %v469_v53 }
 0x197   : > { %1377 = vmatpush3.bf16.msra.mxu1 %v1358_v56 }
 0x24d   : > { %v1188_v58 = vpop.f32.mrb[0].mxu1 }
 0x24e   : > { %v567_v59 = vadd.f32 %v1188_v58, %v988_v57  ;;  %v561_v60 = vpop.f32.mrb[1].mxu1 }
 0x24f   : > { %v562_v61 = vadd.f32 %v988_v57, %v561_v60 }
 0x250   : > { %v641_v0 = vmax.f32 %v567_v59, 0.0 }
 0x251   : > { %v640_v62 = vmax.f32 %v562_v61, 0.0  ;;  %v1191_v63 = vpop.f32.mrb[2].mxu1 }
 0x252   : > { %v577_v1 = vadd.f32 %v1191_v63, %v988_v57  ;;  %v571_v2 = vpop.f32.mrb[3].mxu1 }
 0x253   : > { %v572_v3 = vadd.f32 %v988_v57, %v571_v2  ;;  %1242 = vmatprep.mubr.f32.mxu0 %v640_v62 }
 0x254   : > { %1243 = vmatmul.mubr.f32.vlgmr.msra.gmra.mrb[16].mxu0 %v641_v0  ;;  %v643_v6 = vmax.f32 %v577_v1, 0.0 }
 0x255   : > { %v642_v4 = vmax.f32 %v572_v3, 0.0  ;;  %v1194_v5 = vpop.f32.mrb[4].mxu1 }
 0x256   : > { %v587_v7 = vadd.f32 %v1194_v5, %v988_v57  ;;  %v581_v8 = vpop.f32.mrb[5].mxu1 }
 0x257   : > { %v582_v9 = vadd.f32 %v988_v57, %v581_v8  ;;  %1245 = vmatprep.mubr.f32.mxu0 %v642_v4 }
 0x258   : > { %1246 = vmatmul.mubr.f32.gmra.mrb[18].mxu0 %v643_v6  ;;  %v645_v12 = vmax.f32 %v587_v7, 0.0 }
 0x259   : > { %v644_v10 = vmax.f32 %v582_v9, 0.0  ;;  %v1197_v11 = vpop.f32.mrb[6].mxu1 }
 0x25a   : > { %v597_v13 = vadd.f32 %v1197_v11, %v988_v57  ;;  %v591_v14 = vpop.f32.mrb[7].mxu1 }
 0x25b   : > { %v592_v15 = vadd.f32 %v988_v57, %v591_v14  ;;  %1248 = vmatprep.mubr.f32.mxu0 %v644_v10 }
 0x25c   : > { %1249 = vmatmul.mubr.f32.gmra.mrb[20].mxu0 %v645_v12  ;;  %v647_v18 = vmax.f32 %v597_v13, 0.0 }
 0x25d   : > { %v646_v16 = vmax.f32 %v592_v15, 0.0  ;;  %v1200_v17 = vpop.f32.mrb[8].mxu1 }
 0x25e   : > { %v607_v19 = vadd.f32 %v1200_v17, %v988_v57  ;;  %v601_v20 = vpop.f32.mrb[9].mxu1 }
 0x25f   : > { %v602_v21 = vadd.f32 %v988_v57, %v601_v20  ;;  %1251 = vmatprep.mubr.f32.mxu0 %v646_v16 }
 0x260   : > { %1252 = vmatmul.mubr.f32.gmra.mrb[22].mxu0 %v647_v18  ;;  %v649_v24 = vmax.f32 %v607_v19, 0.0 }
 0x261   : > { %v648_v22 = vmax.f32 %v602_v21, 0.0  ;;  %v1203_v23 = vpop.f32.mrb[10].mxu1 }
 0x262   : > { %v617_v25 = vadd.f32 %v1203_v23, %v988_v57  ;;  %v611_v26 = vpop.f32.mrb[11].mxu1 }
 0x263   : > { %v612_v27 = vadd.f32 %v988_v57, %v611_v26  ;;  %1254 = vmatprep.mubr.f32.mxu1 %v648_v22 }
 0x264   : > { %1255 = vmatmul.mubr.f32.vlgmr.msra.gmra.mrb[16].mxu1 %v649_v24  ;;  %v651_v30 = vmax.f32 %v617_v25, 0.0 }
 0x265   : > { %v650_v28 = vmax.f32 %v612_v27, 0.0  ;;  %v1206_v29 = vpop.f32.mrb[12].mxu1 }
 0x266   : > { %v627_v31 = vadd.f32 %v1206_v29, %v988_v57  ;;  %v621_v32 = vpop.f32.mrb[13].mxu1 }
 0x267   : > { %v622_v33 = vadd.f32 %v988_v57, %v621_v32  ;;  %1257 = vmatprep.mubr.f32.mxu1 %v650_v28 }
 0x268   : > { %1258 = vmatmul.mubr.f32.gmra.mrb[18].mxu1 %v651_v30  ;;  %v653_v36 = vmax.f32 %v627_v31, 0.0 }
 0x269   : > { %v652_v34 = vmax.f32 %v622_v33, 0.0  ;;  %v1209_v35 = vpop.f32.mrb[14].mxu1 }
 0x26a   : > { %v637_v37 = vadd.f32 %v1209_v35, %v988_v57  ;;  %v631_v38 = vpop.f32.mrb[15].mxu1 }
 0x26b   : > { %v632_v39 = vadd.f32 %v988_v57, %v631_v38  ;;  %1260 = vmatprep.mubr.f32.mxu1 %v652_v34 }
 0x26c   : > { %1261 = vmatmul.mubr.f32.gmra.mrb[20].mxu1 %v653_v36  ;;  %v655_v41 = vmax.f32 %v637_v37, 0.0 }
 0x26d   : > { %v654_v40 = vmax.f32 %v632_v39, 0.0 }
 0x26f   : > { %1263 = vmatprep.mubr.f32.mxu1 %v654_v40 }
 0x270   : > { %1264 = vmatmul.mubr.f32.gmra.mrb[22].mxu1 %v655_v41 }
 0x327   : > { %v1244_v43 = vpop.f32.mrb[16].mxu0 }
 0x328   : > { %v753_v44 = vadd.f32 %v1244_v43, %v990_v42  ;;  %v747_v45 = vpop.f32.mrb[17].mxu0 }
 0x329   : > { %v748_v46 = vadd.f32 %v990_v42, %v747_v45 }
 0x32a   : > { %v827_v47 = vmax.f32 %v753_v44, 0.0 }
 0x32b   : > { %v826_v48 = vmax.f32 %v748_v46, 0.0  ;;  %v1247_v49 = vpop.f32.mrb[18].mxu0 }
 0x32c   : > { %843 = vst [vmem:[%s1854_s17 + $0x8] sm:$0xff] %v827_v47  ;;  %v763_v50 = vadd.f32 %v1247_v49, %v990_v42  ;;  %v757_v51 = vpop.f32.mrb[19].mxu0 }
 0x32d   : > { %842 = vst [vmem:[%s1854_s17] sm:$0xff] %v826_v48  ;;  %v758_v52 = vadd.f32 %v990_v42, %v757_v51 }
 0x32e   : > { %v829_v53 = vmax.f32 %v763_v50, 0.0 }
 0x32f   : > { %v828_v54 = vmax.f32 %v758_v52, 0.0  ;;  %v1250_v55 = vpop.f32.mrb[20].mxu0 }
 0x330   : > { %845 = vst [vmem:[%s1854_s17 + $0x18] sm:$0xff] %v829_v53  ;;  %v773_v56 = vadd.f32 %v1250_v55, %v990_v42  ;;  %v767_v57 = vpop.f32.mrb[21].mxu0 }
 0x331   : > { %844 = vst [vmem:[%s1854_s17 + $0x10] sm:$0xff] %v828_v54  ;;  %v768_v58 = vadd.f32 %v990_v42, %v767_v57 }
 0x332   : > { %v831_v59 = vmax.f32 %v773_v56, 0.0 }
 0x333   : > { %v830_v60 = vmax.f32 %v768_v58, 0.0  ;;  %v1253_v61 = vpop.f32.mrb[22].mxu0 }
 0x334   : > { %847 = vst [vmem:[%s1854_s17 + $0x28] sm:$0xff] %v831_v59  ;;  %v783_v62 = vadd.f32 %v1253_v61, %v990_v42  ;;  %v777_v63 = vpop.f32.mrb[23].mxu0 }
 0x335   : > { %846 = vst [vmem:[%s1854_s17 + $0x20] sm:$0xff] %v830_v60  ;;  %v778_v0 = vadd.f32 %v990_v42, %v777_v63 }
 0x336   : > { %v833_v1 = vmax.f32 %v783_v62, 0.0 }
 0x337   : > { %v832_v2 = vmax.f32 %v778_v0, 0.0  ;;  %v1256_v3 = vpop.f32.mrb[16].mxu1 }
 0x338   : > { %849 = vst [vmem:[%s1854_s17 + $0x38] sm:$0xff] %v833_v1  ;;  %v793_v4 = vadd.f32 %v1256_v3, %v990_v42  ;;  %v787_v5 = vpop.f32.mrb[17].mxu1 }
 0x339   : > { %848 = vst [vmem:[%s1854_s17 + $0x30] sm:$0xff] %v832_v2  ;;  %v788_v6 = vadd.f32 %v990_v42, %v787_v5 }
 0x33a   : > { %v835_v7 = vmax.f32 %v793_v4, 0.0 }
 0x33b   : > { %v834_v8 = vmax.f32 %v788_v6, 0.0  ;;  %v1259_v9 = vpop.f32.mrb[18].mxu1 }
 0x33c   : > { %851 = vst [vmem:[%s1854_s17 + $0x48] sm:$0xff] %v835_v7  ;;  %v803_v10 = vadd.f32 %v1259_v9, %v990_v42  ;;  %v797_v11 = vpop.f32.mrb[19].mxu1 }
 0x33d   : > { %850 = vst [vmem:[%s1854_s17 + $0x40] sm:$0xff] %v834_v8  ;;  %v798_v12 = vadd.f32 %v990_v42, %v797_v11 }
 0x33e   : > { %v837_v13 = vmax.f32 %v803_v10, 0.0 }
 0x33f   : > { %v836_v14 = vmax.f32 %v798_v12, 0.0  ;;  %v1262_v15 = vpop.f32.mrb[20].mxu1 }
 0x340   : > { %853 = vst [vmem:[%s1854_s17 + $0x58] sm:$0xff] %v837_v13  ;;  %v813_v16 = vadd.f32 %v1262_v15, %v990_v42  ;;  %v807_v17 = vpop.f32.mrb[21].mxu1 }
 0x341   : > { %852 = vst [vmem:[%s1854_s17 + $0x50] sm:$0xff] %v836_v14  ;;  %v808_v18 = vadd.f32 %v990_v42, %v807_v17 }
 0x342   : > { %v839_v19 = vmax.f32 %v813_v16, 0.0 }
 0x343   : > { %v838_v20 = vmax.f32 %v808_v18, 0.0  ;;  %v1265_v21 = vpop.f32.mrb[22].mxu1  ;;  %865 = sbr.rel (!%p1956_p9) target bundleno = 870 (0x366), region = 56 }
 0x344   : > { %855 = vst [vmem:[%s1854_s17 + $0x68] sm:$0xff] %v839_v19  ;;  %v823_v22 = vadd.f32 %v1265_v21, %v990_v42  ;;  %v817_v23 = vpop.f32.mrb[23].mxu1 }
 0x345   : > { %854 = vst [vmem:[%s1854_s17 + $0x60] sm:$0xff] %v838_v20  ;;  %v818_v24 = vadd.f32 %v990_v42, %v817_v23 }
 0x346   : > { %v841_v25 = vmax.f32 %v823_v22, 0.0 }
 0x347   : > { %v840_v26 = vmax.f32 %v818_v24, 0.0 }
 0x348   : > { %857 = vst [vmem:[%s1854_s17 + $0x78] sm:$0xff] %v841_v25 }
 0x349   : > { %856 = vst [vmem:[%s1854_s17 + $0x70] sm:$0xff] %v840_v26 }
 0x34a   : > { %s1966_s28 = smov (!%p868_p10, %s867_s28), 16 }
 0x34b   : > { %s1876_s23 = sshll.u32 %s1966_s28, 7 }
 0x34c   : > { %s872_s25 = ssub.s32 2048, %s1876_s23 }
 0x34d   : > { %873 = vsyncadd %s859_s12, %s872_s25  ;;  %p994_p1 = scmp.ne.s32.totalorder %s1876_s23, 0  ;;  %s1001_s30 = sshll.u32 %s1661_s22, 11 }
 0x34e   : > { %s1886_s15 = scalar_lea.hbm %s1940_s5, %s1001_s30  ;;  %s878_s16 = sshll.u32 %s1854_s17, 4  ;;  %s1889_s16 = int_to_ptr.vmem [resolvable:$true] %s878_s16 }
 0x34f   : > { %s1528_s29 = scalar_lea.vmem %s1889_s16, %s1876_s23  ;;  %s1607_s7 = smov [#allocation8]  }
 0x350   : > { %p1529_p3 = scmp.ne.s32.totalorder %s1889_s16, %s1528_s29  ;;  %s1532_s10 = sshll.u32 %s1607_s7, 4  ;;  %s1533_s10 = int_to_ptr.vmem [resolvable:$false] %s1532_s10 }
 0x351   : > { %s1534_s22 = scalar_lea.vmem %s1533_s10, 4096  ;;  %p1535_p11 = scmp.lt.s32.totalorder %s1889_s16, %s1533_s10 }
 0x352   : > { %p1530_p5 = pnand %p1529_p3, %p994_p1  ;;  %p1536_p13 = scmp.lt.s32.totalorder %s1534_s22, %s1528_s29 }
 0x354   : > { %p1531_p6 = pneg %p1530_p5  ;;  %p1537_p0 = por %p1536_p13, %p1535_p11 }
 0x356   : > { %p1538_p12 = pnand %p1537_p0, %p1531_p6 }
 0x358   : > { %1541 = shalt.err (!%p1538_p12)
}
 0x359   : > { %s1542_s8 = scalar_lea.hbm %s1886_s15, %s1876_s23  ;;  %s1546_s17 = scalar_lea.hbm %s1940_s5, 3200 }
 0x35a   : > { %p1543_p7 = scmp.ne.s32.totalorder %s1886_s15, %s1542_s8  ;;  %p1547_p9 = scmp.lt.u32.totalorder %s1886_s15, %s1940_s5 }
 0x35b   : > { %p1548_p10 = scmp.lt.u32.totalorder %s1546_s17, %s1542_s8  ;;  %p1550_p5 = scmp.lt.u32.totalorder %s1542_s8, %s1886_s15 }
 0x35c   : > { %p1544_p2 = pnand %p1543_p7, %p994_p1 }
 0x35d   : > { %p1549_p3 = por %p1548_p10, %p1547_p9 }
 0x35e   : > { %p1545_p8 = pneg %p1544_p2 }
 0x35f   : > { %p1551_p6 = por %p1550_p5, %p1549_p3 }
 0x361   : > { %p1552_p11 = pnand %p1551_p6, %p1545_p8 }
 0x363   : > { %1555 = shalt.err (!%p1552_p11)
}
 0x364   : > { %s1608_s25 = smov 128   ;;  %s1609_s30 = smov 8  }
 0x365   : > { %884 = dma.vmem_to_hbm [thread:$0]  (%p994_p1), %s1889_s16, %s1876_s23, %s1886_s15, %s859_s12, %s1608_s25, %s1608_s25, %s1609_s30  }
 0x366 PF: > { %s893_s27 = sand.u32 1, %s1586_s18   ;;  %p1957_p13 = scmp.ne.s32.totalorder %s1948_s6, 0 }
 0x367   : > { %s894_s14 = scalar_lea.sflag [#allocation4], %s893_s27 }
 0x368   : > { %p1396_p0 = pnand %p974_p4, %p1957_p13 }
 0x36a   : > { %1581 = dma.done.wait (!%p1396_p0), %s894_s14, 2048  }
 0x36b   : > { %1583 = vsyncadd (!%p1396_p0), %s894_s14, 4294965248  ;;  %s1958_s29 = sld [smem:[#allocation12_spill]]  ;;  %p19_p12 = scmp.ge.s32.totalorder %s1665_s24, 4  }
 0x36c   : > { %s1959_s18 = smov %s1590_s19  ;;  %s1960_s19 = smov %s1594_s20 }
 0x36d   : > { %s1962_s21 = smov %s1665_s24  ;;  %21 = sbr.rel (!%p19_p12) target bundleno = 6 (0x6), region = 95 }
 0x371   : > { %s1961_s20 = smov %s1958_s29 }
 0x374   :  { %899 = vsyncpa [#allocation3], 1 }
 0x375   :  { %901 = vsyncpa [#allocation3 + $0x1], 1 }
 0x376   :  { %902 = vsyncpa [#allocation6], 1 }
 0x377   :  { %903 = vsyncpa [#allocation4], 1 }
 0x378   :  { %905 = vsyncpa [#allocation4 + $0x1], 1 }

</bundles_post_ra>
